<compile_context>
chip_gen: v6e
topology: v6e:2x2x1
jax: 0.10.0
libtpu: 0.0.40
codegen_flags: <defaults>
</compile_context>

<pallas_src>
import functools

import jax
import jax.numpy as jnp
from jax.experimental import pallas as pl
from jax.experimental.pallas import tpu as pltpu


def _loss_kernel(pred_ref, tgt_ref, out_ref, *, C, ts_sub, use_focal, gamma):
    """One (batch, spatial-tile) grid step.

    pred_ref : (1, C, ts_sub, 128)       logits (native dtype, upcast in kernel)
    tgt_ref  : (1, 1, ts_sub, 128) int8  class index, -1 marks padded pixels
    out_ref  : (1, 2*(C-1)+1, 8, 128) f32 per-batch partial sums (resident over s)
    """
    s = pl.program_id(1)
    n_fg = C - 1

    # -- init the per-batch partial sums on the first spatial tile -----------
    @pl.when(s == 0)
    def _():
        out_ref[...] = jnp.zeros_like(out_ref)

    t = tgt_ref[0, 0].astype(jnp.int32)                  # (ts_sub, 128)
    valid = (t >= 0).astype(jnp.float32)                 # padded pixels carry -1

    def fold(x):
        # (ts_sub, 128) -> (8, 128): fold the sublane axis with pure vreg adds
        # (VALU) so each accumulator RMW touches exactly one vreg.
        return jnp.sum(x.reshape(ts_sub // 8, 8, 128), axis=0)

    # -- pass 1: channel max (softmax) + target-logit gather (CE) ------------
    p = pred_ref[0, 0].astype(jnp.float32)
    m = p
    p_tgt = None
    if not use_focal:
        p_tgt = jnp.where(t == 0, p, 0.0)
    for c in range(1, C):
        p = pred_ref[0, c].astype(jnp.float32)
        m = jnp.maximum(m, p)
        if not use_focal:
            p_tgt = p_tgt + jnp.where(t == c, p, 0.0)

    # -- pass 2: exp / denominator (es kept live to avoid doubling EUP work) -
    es = [jnp.exp(pred_ref[0, c].astype(jnp.float32) - m) for c in range(C)]
    se = es[0]
    for c in range(1, C):
        se = se + es[c]
    inv_se = 1.0 / se

    # -- dice statistics: foreground channels only, sublane-folded RMW -------
    for c in range(1, C):
        oh = (t == c).astype(jnp.float32)
        sm = es[c] * inv_se
        out_ref[0, c - 1] += fold(sm * oh)               # intersection
        out_ref[0, n_fg + c - 1] += fold(sm * valid)     # prediction sum

    # -- second loss term -----------------------------------------------------
    if use_focal:
        int_gamma = float(gamma).is_integer() and gamma >= 0
        fl = jnp.zeros((ts_sub, 128), jnp.float32)
        for c in range(C):
            p = pred_ref[0, c].astype(jnp.float32)
            oh = (t == c).astype(jnp.float32)
            E = jnp.exp(-jnp.abs(p))                     # shared: |p*(2*oh-1)| == |p|
            # E in (0, 1] so log(1+E) is well conditioned; plain log keeps the
            # Mosaic lowering on the known-good path.
            bce = jnp.maximum(p, 0.0) - p * oh + jnp.log(1.0 + E)
            z = p * (2.0 * oh - 1.0)
            # sigmoid(-z); both cases share the 1/(1+E) factor.
            # TODO(synk): pl.reciprocal(1+E, approx=True) would shave EUP work but
            # adds ~1e-3 relative error to the modulator; kept exact for tolerance.
            sig_neg_z = jnp.where(z > 0.0, E, 1.0) / (1.0 + E)
            if int_gamma:
                modf = jnp.ones_like(sig_neg_z)
                for _ in range(int(round(float(gamma)))):
                    modf = modf * sig_neg_z              # sigmoid(-z)**gamma, no log/exp
            else:
                modf = jnp.exp(gamma * jnp.log(sig_neg_z))
            fl = fl + modf * bce
        out_ref[0, 2 * n_fg] += fold(fl * valid)
    else:
        lse = m + jnp.log(se)
        out_ref[0, 2 * n_fg] += fold((lse - p_tgt) * valid)


def _physical_vmem_bytes():
    # Per-generation VMEM (v5e/v6e: 128 MiB, v7x: 64 MiB per TC); conservative fallback.
    try:
        return int(pltpu.get_tpu_info().vmem_capacity_bytes)
    except Exception:
        return 64 << 20


def nnunet_loss(y_pred, y_true, *, use_focal=False, gamma=2.0,
                smooth_nr=1e-5, smooth_dr=1e-5, max_ts_sub=512,
                pred_stream_dtype=None):
    """Pallas implementation of nnUNet Loss.forward(y_pred, y_true).

    pred_stream_dtype: optionally stream logits narrower (e.g. jnp.bfloat16) on
    bandwidth-bound v5e/v6e; default keeps the caller's dtype bit-exact.
    """
    N, C, H, W = y_pred.shape
    assert y_true.shape == (N, 1, H, W)
    assert C >= 2, "Dice with include_background=False requires C >= 2"
    assert C <= 127, "int8 target stream requires C <= 127"
    S = H * W
    n_fg = C - 1
    n_stats = 2 * n_fg + 1

    if pred_stream_dtype is not None:
        y_pred = y_pred.astype(pred_stream_dtype)
    pred_itemsize = jnp.dtype(y_pred.dtype).itemsize

    # -- tile geometry: lane axis = dense 128-wide spatial chunk ---------------
    s128 = -(-S // 128)                       # spatial rows of 128 lanes
    s8 = -(-s128 // 8) * 8                    # sublane fold needs a multiple of 8

    phys_vmem = _physical_vmem_bytes()
    vmem_cap = (phys_vmem * 5) // 8           # per-generation cap with headroom
    bytes_per_row = 128 * (C * pred_itemsize + 1)        # pred + int8 target row
    max_by_vmem = max(8, ((vmem_cap // 2) // (2 * bytes_per_row)) // 8 * 8)
    ts_cap = max(8, (min(max_ts_sub, max_by_vmem, s8) // 8) * 8)

    # Prefer a divisor of s8 (no extra jnp.pad copy of pred); fall back to padding
    # only when the best divisor would make tiles tiny.
    best_div = 8
    for cand in range(8, ts_cap + 1, 8):
        if s8 % cand == 0:
            best_div = cand
    ts_sub = best_div if best_div >= min(64, ts_cap) else ts_cap

    s_rows = -(-s8 // ts_sub) * ts_sub
    S_pad = s_rows * 128
    n_tiles = s_rows // ts_sub

    pred = y_pred.reshape(N, C, S)                        # keep native dtype
    tgt = y_true.reshape(N, 1, S).astype(jnp.int8)        # narrow target stream
    if S_pad != S:
        pred = jnp.pad(pred, ((0, 0), (0, 0), (0, S_pad - S)))
        tgt = jnp.pad(tgt, ((0, 0), (0, 0), (0, S_pad - S)), constant_values=-1)
    pred = pred.reshape(N, C, s_rows, 128)
    tgt = tgt.reshape(N, 1, s_rows, 128)

    block_bytes = (2 * (C * ts_sub * 128 * pred_itemsize + ts_sub * 128)
                   + n_stats * 8 * 128 * 4)
    vmem_limit = int(min(max(block_bytes + (4 << 20), 16 << 20), vmem_cap))

    kernel = functools.partial(_loss_kernel, C=C, ts_sub=ts_sub,
                               use_focal=use_focal, gamma=gamma)

    partials = pl.pallas_call(
        kernel,
        out_shape=jax.ShapeDtypeStruct((N, n_stats, 8, 128), jnp.float32),
        grid_spec=pltpu.PrefetchScalarGridSpec(
            num_scalar_prefetch=0,
            grid=(N, n_tiles),
            in_specs=[
                pl.BlockSpec((1, C, ts_sub, 128), lambda b, s: (b, 0, s, 0)),
                pl.BlockSpec((1, 1, ts_sub, 128), lambda b, s: (b, 0, s, 0)),
            ],
            out_specs=pl.BlockSpec((1, n_stats, 8, 128), lambda b, s: (b, 0, 0, 0)),
        ),
        compiler_params=pltpu.CompilerParams(
            dimension_semantics=("parallel", "arbitrary"),   # batch axis -> megacore
            vmem_limit_bytes=vmem_limit),
    )(pred, tgt)

    # -- tiny JAX epilogue ------------------------------------------------------
    stats = jnp.sum(partials, axis=(0, 2, 3))             # (n_stats,)
    inter = stats[:n_fg]
    predo = stats[n_fg:2 * n_fg]
    extra_sum = stats[2 * n_fg]

    # Ground-truth per-class counts: cheap int pass in XLA over y_true only
    # (removes C one-hot accumulators per step from the kernel).
    t_flat = y_true.reshape(N, S).astype(jnp.int32)
    cls = jnp.arange(1, C, dtype=jnp.int32).reshape(n_fg, 1, 1)
    ground = jnp.sum((t_flat[None] == cls).astype(jnp.float32), axis=(1, 2))

    dice = 1.0 - (2.0 * inter + smooth_nr) / (ground + predo + smooth_dr)
    n_extra = float(N) * float(S) * (float(C) if use_focal else 1.0)
    return jnp.mean(dice) + extra_sum / n_extra


# ----------------------------- pure-JAX reference ---------------------------
def reference_loss(y_pred, y_true, *, use_focal=False, gamma=2.0):
    N, C, H, W = y_pred.shape
    p = y_pred.astype(jnp.float32)
    t = y_true[:, 0].astype(jnp.int32)
    onehot = jax.nn.one_hot(t, C, axis=1)                     # (N, C, H, W)

    sm = jax.nn.softmax(p, axis=1)
    inter = jnp.sum(sm * onehot, axis=(0, 2, 3))[1:]
    ground = jnp.sum(onehot, axis=(0, 2, 3))[1:]
    predo = jnp.sum(sm, axis=(0, 2, 3))[1:]
    dice = 1.0 - (2.0 * inter + 1e-5) / (ground + predo + 1e-5)
    loss = jnp.mean(dice)

    if use_focal:
        bce = jnp.maximum(p, 0.0) - p * onehot + jnp.log(1.0 + jnp.exp(-jnp.abs(p)))
        invprobs = -(jnp.maximum(p * (2 * onehot - 1), 0.0)
                     + jnp.log(1.0 + jnp.exp(-jnp.abs(p * (2 * onehot - 1)))))
        loss = loss + jnp.mean(jnp.exp(gamma * invprobs) * bce)
    else:
        lse = jax.scipy.special.logsumexp(p, axis=1)
        pt = jnp.sum(p * onehot, axis=1)
        loss = loss + jnp.mean(lse - pt)
    return loss


if __name__ == "__main__":
    key = jax.random.PRNGKey(0)
    N, C, H, W = 2, 4, 16, 16
    k1, k2 = jax.random.split(key)
    y_pred = jax.random.normal(k1, (N, C, H, W), dtype=jnp.float32)
    y_true = jax.random.randint(k2, (N, 1, H, W), 0, C).astype(jnp.int32)

    # cross-entropy branch (Loss(focal=False))
    loss_ce = nnunet_loss(y_pred, y_true, use_focal=False)
    jax.block_until_ready(loss_ce)
    ref_ce = reference_loss(y_pred, y_true, use_focal=False)
    assert jnp.allclose(loss_ce, ref_ce, rtol=1e-4, atol=1e-5), (loss_ce, ref_ce)

    # focal branch (Loss(focal=True))
    loss_f = nnunet_loss(y_pred, y_true, use_focal=True)
    jax.block_until_ready(loss_f)
    ref_f = reference_loss(y_pred, y_true, use_focal=True)
    assert jnp.allclose(loss_f, ref_f, rtol=1e-4, atol=1e-5), (loss_f, ref_f)

    print("KERNEL_OK")
</pallas_src>

<mosaic_0001>
module attributes {stable_mosaic.version = 11 : i64} {
  func.func @_loss_kernel(%arg0: i32, %arg1: i32, %arg2: memref<1x4x8x128xf32, #tpu.memory_space<vmem>>, %arg3: memref<1x1x8x128xi8, #tpu.memory_space<vmem>>, %arg4: memref<1x7x8x128xf32, #tpu.memory_space<vmem>>) attributes {dimension_semantics = [#tpu.dimension_semantics<parallel>, #tpu.dimension_semantics<arbitrary>], iteration_bounds = array<i64: 2, 1>, scalar_prefetch = 0 : i64, scratch_operands = 0 : i64, tpu.core_type = #tpu.core_type<tc>, window_params = [{transform_indices = @transform_0, window_bounds = array<i64: 1, 4, 8, 128>}, {transform_indices = @transform_1, window_bounds = array<i64: 1, 1, 8, 128>}, {transform_indices = @transform_2, window_bounds = array<i64: 1, 7, 8, 128>}]} {
    %c0_i32 = arith.constant 0 : i32
    %0 = arith.cmpi eq, %arg1, %c0_i32 : i32
    %1 = arith.extui %0 : i1 to i32
    %c0_i32_0 = arith.constant 0 : i32
    %2 = arith.cmpi ne, %1, %c0_i32_0 : i32
    scf.if %2 {
      %cst_102 = arith.constant 0.000000e+00 : f32
      %142 = vector.broadcast %cst_102 : f32 to vector<1x7x8x128xf32>
      %c0_103 = arith.constant 0 : index
      %c0_104 = arith.constant 0 : index
      %c0_105 = arith.constant 0 : index
      %c0_106 = arith.constant 0 : index
      %143 = vector.load %arg4[%c0_103, %c0_104, %c0_105, %c0_106] : memref<1x7x8x128xf32, #tpu.memory_space<vmem>>, vector<1x7x8x128xf32>
      tpu.vector_store %arg4[%c0_103, %c0_104, %c0_105, %c0_106], %142 {strides = array<i32>} : memref<1x7x8x128xf32, #tpu.memory_space<vmem>>, vector<1x7x8x128xf32>,
    } else {
    }
    %c0 = arith.constant 0 : index
    %c0_1 = arith.constant 0 : index
    %c0_2 = arith.constant 0 : index
    %c0_3 = arith.constant 0 : index
    %3 = vector.load %arg3[%c0, %c0_1, %c0_2, %c0_3] : memref<1x1x8x128xi8, #tpu.memory_space<vmem>>, vector<1x1x8x128xi8>
    %4 = vector.shape_cast %3 : vector<1x1x8x128xi8> to vector<8x128xi8>
    %5 = arith.extsi %4 : vector<8x128xi8> to vector<8x128xi32>
    %c0_i32_4 = arith.constant 0 : i32
    %6 = vector.broadcast %c0_i32_4 : i32 to vector<8x128xi32>
    %7 = arith.cmpi sge, %5, %6 : vector<8x128xi32>
    %8 = arith.extui %7 : vector<8x128xi1> to vector<8x128xi32>
    %9 = arith.sitofp %8 : vector<8x128xi32> to vector<8x128xf32>
    %c0_5 = arith.constant 0 : index
    %c0_6 = arith.constant 0 : index
    %c0_7 = arith.constant 0 : index
    %c0_8 = arith.constant 0 : index
    %10 = vector.load %arg2[%c0_5, %c0_6, %c0_7, %c0_8] : memref<1x4x8x128xf32, #tpu.memory_space<vmem>>, vector<1x1x8x128xf32>
    %11 = vector.shape_cast %10 : vector<1x1x8x128xf32> to vector<8x128xf32>
    %c0_i32_9 = arith.constant 0 : i32
    %12 = vector.broadcast %c0_i32_9 : i32 to vector<8x128xi32>
    %13 = arith.cmpi eq, %5, %12 : vector<8x128xi32>
    %cst = arith.constant 0.000000e+00 : f32
    %14 = vector.broadcast %cst : f32 to vector<8x128xf32>
    %15 = arith.select %13, %11, %14 : vector<8x128xi1>, vector<8x128xf32>
    %c0_10 = arith.constant 0 : index
    %c1 = arith.constant 1 : index
    %c0_11 = arith.constant 0 : index
    %c0_12 = arith.constant 0 : index
    %16 = vector.load %arg2[%c0_10, %c1, %c0_11, %c0_12] : memref<1x4x8x128xf32, #tpu.memory_space<vmem>>, vector<1x1x8x128xf32>
    %17 = vector.shape_cast %16 : vector<1x1x8x128xf32> to vector<8x128xf32>
    %18 = arith.maximumf %11, %17 : vector<8x128xf32>
    %c1_i32 = arith.constant 1 : i32
    %19 = vector.broadcast %c1_i32 : i32 to vector<8x128xi32>
    %20 = arith.cmpi eq, %5, %19 : vector<8x128xi32>
    %cst_13 = arith.constant 0.000000e+00 : f32
    %21 = vector.broadcast %cst_13 : f32 to vector<8x128xf32>
    %22 = arith.select %20, %17, %21 : vector<8x128xi1>, vector<8x128xf32>
    %23 = arith.addf %15, %22 : vector<8x128xf32>
    %c0_14 = arith.constant 0 : index
    %c2 = arith.constant 2 : index
    %c0_15 = arith.constant 0 : index
    %c0_16 = arith.constant 0 : index
    %24 = vector.load %arg2[%c0_14, %c2, %c0_15, %c0_16] : memref<1x4x8x128xf32, #tpu.memory_space<vmem>>, vector<1x1x8x128xf32>
    %25 = vector.shape_cast %24 : vector<1x1x8x128xf32> to vector<8x128xf32>
    %26 = arith.maximumf %18, %25 : vector<8x128xf32>
    %c2_i32 = arith.constant 2 : i32
    %27 = vector.broadcast %c2_i32 : i32 to vector<8x128xi32>
    %28 = arith.cmpi eq, %5, %27 : vector<8x128xi32>
    %cst_17 = arith.constant 0.000000e+00 : f32
    %29 = vector.broadcast %cst_17 : f32 to vector<8x128xf32>
    %30 = arith.select %28, %25, %29 : vector<8x128xi1>, vector<8x128xf32>
    %31 = arith.addf %23, %30 : vector<8x128xf32>
    %c0_18 = arith.constant 0 : index
    %c3 = arith.constant 3 : index
    %c0_19 = arith.constant 0 : index
    %c0_20 = arith.constant 0 : index
    %32 = vector.load %arg2[%c0_18, %c3, %c0_19, %c0_20] : memref<1x4x8x128xf32, #tpu.memory_space<vmem>>, vector<1x1x8x128xf32>
    %33 = vector.shape_cast %32 : vector<1x1x8x128xf32> to vector<8x128xf32>
    %34 = arith.maximumf %26, %33 : vector<8x128xf32>
    %c3_i32 = arith.constant 3 : i32
    %35 = vector.broadcast %c3_i32 : i32 to vector<8x128xi32>
    %36 = arith.cmpi eq, %5, %35 : vector<8x128xi32>
    %cst_21 = arith.constant 0.000000e+00 : f32
    %37 = vector.broadcast %cst_21 : f32 to vector<8x128xf32>
    %38 = arith.select %36, %33, %37 : vector<8x128xi1>, vector<8x128xf32>
    %39 = arith.addf %31, %38 : vector<8x128xf32>
    %c0_22 = arith.constant 0 : index
    %c0_23 = arith.constant 0 : index
    %c0_24 = arith.constant 0 : index
    %c0_25 = arith.constant 0 : index
    %40 = vector.load %arg2[%c0_22, %c0_23, %c0_24, %c0_25] : memref<1x4x8x128xf32, #tpu.memory_space<vmem>>, vector<1x1x8x128xf32>
    %41 = vector.shape_cast %40 : vector<1x1x8x128xf32> to vector<8x128xf32>
    %42 = arith.subf %41, %34 : vector<8x128xf32>
    %43 = math.exp %42 : vector<8x128xf32>
    %c0_26 = arith.constant 0 : index
    %c1_27 = arith.constant 1 : index
    %c0_28 = arith.constant 0 : index
    %c0_29 = arith.constant 0 : index
    %44 = vector.load %arg2[%c0_26, %c1_27, %c0_28, %c0_29] : memref<1x4x8x128xf32, #tpu.memory_space<vmem>>, vector<1x1x8x128xf32>
    %45 = vector.shape_cast %44 : vector<1x1x8x128xf32> to vector<8x128xf32>
    %46 = arith.subf %45, %34 : vector<8x128xf32>
    %47 = math.exp %46 : vector<8x128xf32>
    %c0_30 = arith.constant 0 : index
    %c2_31 = arith.constant 2 : index
    %c0_32 = arith.constant 0 : index
    %c0_33 = arith.constant 0 : index
    %48 = vector.load %arg2[%c0_30, %c2_31, %c0_32, %c0_33] : memref<1x4x8x128xf32, #tpu.memory_space<vmem>>, vector<1x1x8x128xf32>
    %49 = vector.shape_cast %48 : vector<1x1x8x128xf32> to vector<8x128xf32>
    %50 = arith.subf %49, %34 : vector<8x128xf32>
    %51 = math.exp %50 : vector<8x128xf32>
    %c0_34 = arith.constant 0 : index
    %c3_35 = arith.constant 3 : index
    %c0_36 = arith.constant 0 : index
    %c0_37 = arith.constant 0 : index
    %52 = vector.load %arg2[%c0_34, %c3_35, %c0_36, %c0_37] : memref<1x4x8x128xf32, #tpu.memory_space<vmem>>, vector<1x1x8x128xf32>
    %53 = vector.shape_cast %52 : vector<1x1x8x128xf32> to vector<8x128xf32>
    %54 = arith.subf %53, %34 : vector<8x128xf32>
    %55 = math.exp %54 : vector<8x128xf32>
    %56 = arith.addf %43, %47 : vector<8x128xf32>
    %57 = arith.addf %56, %51 : vector<8x128xf32>
    %58 = arith.addf %57, %55 : vector<8x128xf32>
    %cst_38 = arith.constant 1.000000e+00 : f32
    %59 = vector.broadcast %cst_38 : f32 to vector<8x128xf32>
    %60 = arith.divf %59, %58 : vector<8x128xf32>
    %c1_i32_39 = arith.constant 1 : i32
    %61 = vector.broadcast %c1_i32_39 : i32 to vector<8x128xi32>
    %62 = arith.cmpi eq, %5, %61 : vector<8x128xi32>
    %63 = arith.extui %62 : vector<8x128xi1> to vector<8x128xi32>
    %64 = arith.sitofp %63 : vector<8x128xi32> to vector<8x128xf32>
    %65 = arith.mulf %47, %60 : vector<8x128xf32>
    %c0_40 = arith.constant 0 : index
    %c0_41 = arith.constant 0 : index
    %c0_42 = arith.constant 0 : index
    %c0_43 = arith.constant 0 : index
    %66 = vector.load %arg4[%c0_40, %c0_41, %c0_42, %c0_43] : memref<1x7x8x128xf32, #tpu.memory_space<vmem>>, vector<1x1x8x128xf32>
    %67 = vector.shape_cast %66 : vector<1x1x8x128xf32> to vector<8x128xf32>
    %68 = arith.mulf %65, %64 : vector<8x128xf32>
    %69 = vector.shape_cast %68 : vector<8x128xf32> to vector<1x8x128xf32>
    %cst_44 = arith.constant dense<0.000000e+00> : vector<8x128xf32>
    %70 = vector.multi_reduction <add>, %69, %cst_44 [0] : vector<1x8x128xf32> to vector<8x128xf32>
    %71 = arith.addf %67, %70 : vector<8x128xf32>
    %c0_45 = arith.constant 0 : index
    %c0_46 = arith.constant 0 : index
    %c0_47 = arith.constant 0 : index
    %c0_48 = arith.constant 0 : index
    %72 = vector.load %arg4[%c0_45, %c0_46, %c0_47, %c0_48] : memref<1x7x8x128xf32, #tpu.memory_space<vmem>>, vector<1x1x8x128xf32>
    %73 = vector.shape_cast %72 : vector<1x1x8x128xf32> to vector<8x128xf32>
    %74 = vector.shape_cast %71 : vector<8x128xf32> to vector<1x1x8x128xf32>
    tpu.vector_store %arg4[%c0_45, %c0_46, %c0_47, %c0_48], %74 {strides = array<i32>} : memref<1x7x8x128xf32, #tpu.memory_space<vmem>>, vector<1x1x8x128xf32>,
    %c0_49 = arith.constant 0 : index
    %c3_50 = arith.constant 3 : index
    %c0_51 = arith.constant 0 : index
    %c0_52 = arith.constant 0 : index
    %75 = vector.load %arg4[%c0_49, %c3_50, %c0_51, %c0_52] : memref<1x7x8x128xf32, #tpu.memory_space<vmem>>, vector<1x1x8x128xf32>
    %76 = vector.shape_cast %75 : vector<1x1x8x128xf32> to vector<8x128xf32>
    %77 = arith.mulf %65, %9 : vector<8x128xf32>
    %78 = vector.shape_cast %77 : vector<8x128xf32> to vector<1x8x128xf32>
    %cst_53 = arith.constant dense<0.000000e+00> : vector<8x128xf32>
    %79 = vector.multi_reduction <add>, %78, %cst_53 [0] : vector<1x8x128xf32> to vector<8x128xf32>
    %80 = arith.addf %76, %79 : vector<8x128xf32>
    %c0_54 = arith.constant 0 : index
    %c3_55 = arith.constant 3 : index
    %c0_56 = arith.constant 0 : index
    %c0_57 = arith.constant 0 : index
    %81 = vector.load %arg4[%c0_54, %c3_55, %c0_56, %c0_57] : memref<1x7x8x128xf32, #tpu.memory_space<vmem>>, vector<1x1x8x128xf32>
    %82 = vector.shape_cast %81 : vector<1x1x8x128xf32> to vector<8x128xf32>
    %83 = vector.shape_cast %80 : vector<8x128xf32> to vector<1x1x8x128xf32>
    tpu.vector_store %arg4[%c0_54, %c3_55, %c0_56, %c0_57], %83 {strides = array<i32>} : memref<1x7x8x128xf32, #tpu.memory_space<vmem>>, vector<1x1x8x128xf32>,
    %c2_i32_58 = arith.constant 2 : i32
    %84 = vector.broadcast %c2_i32_58 : i32 to vector<8x128xi32>
    %85 = arith.cmpi eq, %5, %84 : vector<8x128xi32>
    %86 = arith.extui %85 : vector<8x128xi1> to vector<8x128xi32>
    %87 = arith.sitofp %86 : vector<8x128xi32> to vector<8x128xf32>
    %88 = arith.mulf %51, %60 : vector<8x128xf32>
    %c0_59 = arith.constant 0 : index
    %c1_60 = arith.constant 1 : index
    %c0_61 = arith.constant 0 : index
    %c0_62 = arith.constant 0 : index
    %89 = vector.load %arg4[%c0_59, %c1_60, %c0_61, %c0_62] : memref<1x7x8x128xf32, #tpu.memory_space<vmem>>, vector<1x1x8x128xf32>
    %90 = vector.shape_cast %89 : vector<1x1x8x128xf32> to vector<8x128xf32>
    %91 = arith.mulf %88, %87 : vector<8x128xf32>
    %92 = vector.shape_cast %91 : vector<8x128xf32> to vector<1x8x128xf32>
    %cst_63 = arith.constant dense<0.000000e+00> : vector<8x128xf32>
    %93 = vector.multi_reduction <add>, %92, %cst_63 [0] : vector<1x8x128xf32> to vector<8x128xf32>
    %94 = arith.addf %90, %93 : vector<8x128xf32>
    %c0_64 = arith.constant 0 : index
    %c1_65 = arith.constant 1 : index
    %c0_66 = arith.constant 0 : index
    %c0_67 = arith.constant 0 : index
    %95 = vector.load %arg4[%c0_64, %c1_65, %c0_66, %c0_67] : memref<1x7x8x128xf32, #tpu.memory_space<vmem>>, vector<1x1x8x128xf32>
    %96 = vector.shape_cast %95 : vector<1x1x8x128xf32> to vector<8x128xf32>
    %97 = vector.shape_cast %94 : vector<8x128xf32> to vector<1x1x8x128xf32>
    tpu.vector_store %arg4[%c0_64, %c1_65, %c0_66, %c0_67], %97 {strides = array<i32>} : memref<1x7x8x128xf32, #tpu.memory_space<vmem>>, vector<1x1x8x128xf32>,
    %c0_68 = arith.constant 0 : index
    %c4 = arith.constant 4 : index
    %c0_69 = arith.constant 0 : index
    %c0_70 = arith.constant 0 : index
    %98 = vector.load %arg4[%c0_68, %c4, %c0_69, %c0_70] : memref<1x7x8x128xf32, #tpu.memory_space<vmem>>, vector<1x1x8x128xf32>
    %99 = vector.shape_cast %98 : vector<1x1x8x128xf32> to vector<8x128xf32>
    %100 = arith.mulf %88, %9 : vector<8x128xf32>
    %101 = vector.shape_cast %100 : vector<8x128xf32> to vector<1x8x128xf32>
    %cst_71 = arith.constant dense<0.000000e+00> : vector<8x128xf32>
    %102 = vector.multi_reduction <add>, %101, %cst_71 [0] : vector<1x8x128xf32> to vector<8x128xf32>
    %103 = arith.addf %99, %102 : vector<8x128xf32>
    %c0_72 = arith.constant 0 : index
    %c4_73 = arith.constant 4 : index
    %c0_74 = arith.constant 0 : index
    %c0_75 = arith.constant 0 : index
    %104 = vector.load %arg4[%c0_72, %c4_73, %c0_74, %c0_75] : memref<1x7x8x128xf32, #tpu.memory_space<vmem>>, vector<1x1x8x128xf32>
    %105 = vector.shape_cast %104 : vector<1x1x8x128xf32> to vector<8x128xf32>
    %106 = vector.shape_cast %103 : vector<8x128xf32> to vector<1x1x8x128xf32>
    tpu.vector_store %arg4[%c0_72, %c4_73, %c0_74, %c0_75], %106 {strides = array<i32>} : memref<1x7x8x128xf32, #tpu.memory_space<vmem>>, vector<1x1x8x128xf32>,
    %c3_i32_76 = arith.constant 3 : i32
    %107 = vector.broadcast %c3_i32_76 : i32 to vector<8x128xi32>
    %108 = arith.cmpi eq, %5, %107 : vector<8x128xi32>
    %109 = arith.extui %108 : vector<8x128xi1> to vector<8x128xi32>
    %110 = arith.sitofp %109 : vector<8x128xi32> to vector<8x128xf32>
    %111 = arith.mulf %55, %60 : vector<8x128xf32>
    %c0_77 = arith.constant 0 : index
    %c2_78 = arith.constant 2 : index
    %c0_79 = arith.constant 0 : index
    %c0_80 = arith.constant 0 : index
    %112 = vector.load %arg4[%c0_77, %c2_78, %c0_79, %c0_80] : memref<1x7x8x128xf32, #tpu.memory_space<vmem>>, vector<1x1x8x128xf32>
    %113 = vector.shape_cast %112 : vector<1x1x8x128xf32> to vector<8x128xf32>
    %114 = arith.mulf %111, %110 : vector<8x128xf32>
    %115 = vector.shape_cast %114 : vector<8x128xf32> to vector<1x8x128xf32>
    %cst_81 = arith.constant dense<0.000000e+00> : vector<8x128xf32>
    %116 = vector.multi_reduction <add>, %115, %cst_81 [0] : vector<1x8x128xf32> to vector<8x128xf32>
    %117 = arith.addf %113, %116 : vector<8x128xf32>
    %c0_82 = arith.constant 0 : index
    %c2_83 = arith.constant 2 : index
    %c0_84 = arith.constant 0 : index
    %c0_85 = arith.constant 0 : index
    %118 = vector.load %arg4[%c0_82, %c2_83, %c0_84, %c0_85] : memref<1x7x8x128xf32, #tpu.memory_space<vmem>>, vector<1x1x8x128xf32>
    %119 = vector.shape_cast %118 : vector<1x1x8x128xf32> to vector<8x128xf32>
    %120 = vector.shape_cast %117 : vector<8x128xf32> to vector<1x1x8x128xf32>
    tpu.vector_store %arg4[%c0_82, %c2_83, %c0_84, %c0_85], %120 {strides = array<i32>} : memref<1x7x8x128xf32, #tpu.memory_space<vmem>>, vector<1x1x8x128xf32>,
    %c0_86 = arith.constant 0 : index
    %c5 = arith.constant 5 : index
    %c0_87 = arith.constant 0 : index
    %c0_88 = arith.constant 0 : index
    %121 = vector.load %arg4[%c0_86, %c5, %c0_87, %c0_88] : memref<1x7x8x128xf32, #tpu.memory_space<vmem>>, vector<1x1x8x128xf32>
    %122 = vector.shape_cast %121 : vector<1x1x8x128xf32> to vector<8x128xf32>
    %123 = arith.mulf %111, %9 : vector<8x128xf32>
    %124 = vector.shape_cast %123 : vector<8x128xf32> to vector<1x8x128xf32>
    %cst_89 = arith.constant dense<0.000000e+00> : vector<8x128xf32>
    %125 = vector.multi_reduction <add>, %124, %cst_89 [0] : vector<1x8x128xf32> to vector<8x128xf32>
    %126 = arith.addf %122, %125 : vector<8x128xf32>
    %c0_90 = arith.constant 0 : index
    %c5_91 = arith.constant 5 : index
    %c0_92 = arith.constant 0 : index
    %c0_93 = arith.constant 0 : index
    %127 = vector.load %arg4[%c0_90, %c5_91, %c0_92, %c0_93] : memref<1x7x8x128xf32, #tpu.memory_space<vmem>>, vector<1x1x8x128xf32>
    %128 = vector.shape_cast %127 : vector<1x1x8x128xf32> to vector<8x128xf32>
    %129 = vector.shape_cast %126 : vector<8x128xf32> to vector<1x1x8x128xf32>
    tpu.vector_store %arg4[%c0_90, %c5_91, %c0_92, %c0_93], %129 {strides = array<i32>} : memref<1x7x8x128xf32, #tpu.memory_space<vmem>>, vector<1x1x8x128xf32>,
    %130 = math.log %58 : vector<8x128xf32>
    %131 = arith.addf %34, %130 : vector<8x128xf32>
    %c0_94 = arith.constant 0 : index
    %c6 = arith.constant 6 : index
    %c0_95 = arith.constant 0 : index
    %c0_96 = arith.constant 0 : index
    %132 = vector.load %arg4[%c0_94, %c6, %c0_95, %c0_96] : memref<1x7x8x128xf32, #tpu.memory_space<vmem>>, vector<1x1x8x128xf32>
    %133 = vector.shape_cast %132 : vector<1x1x8x128xf32> to vector<8x128xf32>
    %134 = arith.subf %131, %39 : vector<8x128xf32>
    %135 = arith.mulf %134, %9 : vector<8x128xf32>
    %136 = vector.shape_cast %135 : vector<8x128xf32> to vector<1x8x128xf32>
    %cst_97 = arith.constant dense<0.000000e+00> : vector<8x128xf32>
    %137 = vector.multi_reduction <add>, %136, %cst_97 [0] : vector<1x8x128xf32> to vector<8x128xf32>
    %138 = arith.addf %133, %137 : vector<8x128xf32>
    %c0_98 = arith.constant 0 : index
    %c6_99 = arith.constant 6 : index
    %c0_100 = arith.constant 0 : index
    %c0_101 = arith.constant 0 : index
    %139 = vector.load %arg4[%c0_98, %c6_99, %c0_100, %c0_101] : memref<1x7x8x128xf32, #tpu.memory_space<vmem>>, vector<1x1x8x128xf32>
    %140 = vector.shape_cast %139 : vector<1x1x8x128xf32> to vector<8x128xf32>
    %141 = vector.shape_cast %138 : vector<8x128xf32> to vector<1x1x8x128xf32>
    tpu.vector_store %arg4[%c0_98, %c6_99, %c0_100, %c0_101], %141 {strides = array<i32>} : memref<1x7x8x128xf32, #tpu.memory_space<vmem>>, vector<1x1x8x128xf32>,
    return
  }
  func.func @transform_0(%arg0: i32, %arg1: i32) -> (i32, i32, i32, i32) {
    %c0_i32 = arith.constant 0 : i32
    %c0_i32_0 = arith.constant 0 : i32
    %c0_i32_1 = arith.constant 0 : i32
    return %arg0, %c0_i32, %arg1, %c0_i32_0 : i32, i32, i32, i32
  }
  func.func @transform_1(%arg0: i32, %arg1: i32) -> (i32, i32, i32, i32) {
    %c0_i32 = arith.constant 0 : i32
    %c0_i32_0 = arith.constant 0 : i32
    %c0_i32_1 = arith.constant 0 : i32
    return %arg0, %c0_i32, %arg1, %c0_i32_0 : i32, i32, i32, i32
  }
  func.func @transform_2(%arg0: i32, %arg1: i32) -> (i32, i32, i32, i32) {
    %c0_i32 = arith.constant 0 : i32
    %c0_i32_0 = arith.constant 0 : i32
    %c0_i32_1 = arith.constant 0 : i32
    %c0_i32_2 = arith.constant 0 : i32
    return %arg0, %c0_i32, %c0_i32_0, %c0_i32_1 : i32, i32, i32, i32
  }
}

</mosaic_0001>

<bundles_post_ra>
// kernel: tpu_custom_call.1
= control target key start
LH: loop header
LB: loop body
LE: loop exit
PB: predicated region body
PF: predicated region fallthrough
CT: control target
= control target key end

     0   :  { %7 = vsyncpa [#allocation3], 0  ;;  %s909_s0 = inlined_call_operand.hbm [shape: f32[2,4,8,128], index: 0, kind: input, shape index: {}]   ;;  %s910_s1 = inlined_call_operand.hbm [shape: s8[2,1,8,128], index: 1, kind: input, shape index: {}]   ;;  %s911_s2 = inlined_call_operand.hbm [shape: f32[2,7,8,128], index: 2, kind: output, shape index: {}]  }
   0x1   :  { %9 = vsyncpa [#allocation3 + $0x1], 0 }
   0x2   :  { %10 = vsyncpa [#allocation6], 0 }
   0x3   :  { %12 = vsyncpa [#allocation6 + $0x1], 0 }
   0x4   :  { %13 = vsyncpa [#allocation4], 0 }
   0x5   :  { %15 = vsyncpa [#allocation4 + $0x1], 0  ;;  %s732_s9 = smov 0   ;;  %s734_s10 = smov 0  }
   0x6   :  { %s736_s11 = smov 0   ;;  %s738_s12 = smov 0  }
   0x7   :  { %s740_s13 = smov 0   ;;  %s742_s14 = smov 0  }
   0x8 LB: > { %s446_s15 = sadd.s32 4294967295, %s707_s14   ;;  %s447_s16 = sadd.s32 4294967294, %s707_s14   ;;  %s707_s14 = sphi %s742_s14, %s21_s14   ;;  %s703_s13 = sphi %s740_s13, %s922_s13   ;;  %s699_s12 = sphi %s738_s12, %s921_s12   ;;  %s695_s11 = sphi %s736_s11, %s920_s11   ;;  %s691_s10 = sphi %s734_s10, %s919_s10   ;;  %s687_s9 = sphi %s732_s9, %s918_s9  }
   0x9   : > { %s33_s17 = sadd.s32 1, %s703_s13  ;;  %s42_s18 = sadd.s32 1, %s695_s11 }
   0xa   : > { %p35_p0 = scmp.ge.s32.totalorder %s33_s17, 2  ;;  %p49_p1 = scmp.ne.s32.totalorder %s695_s11, %s691_s10 }
   0xb   : > { %p50_p2 = scmp.eq.s32.totalorder %s707_s14, 0  ;;  %p55_p3 = scmp.ne.s32.totalorder %s691_s10, %s687_s9 }
   0xc   : > { %s924_s17 = smov (%p35_p0, %s33_s17), 0  ;;  %p56_p5 = scmp.eq.s32.totalorder %s446_s15, 0 }
   0xd   : > { %p773_p4 = por %p50_p2, %p49_p1  ;;  %s37_s20 = ssub.s32 %s703_s13, %s924_s17 }
   0xe   : > { %p107_p6 = scmp.eq.s32.totalorder %s446_s15, 1  ;;  %p40_p7 = scmp.eq.s32.totalorder %s37_s20, 0 }
   0xf   : > { %p779_p8 = por %p56_p5, %p55_p3  ;;  %p113_p10 = scmp.eq.s32.totalorder %s447_s16, 1 }
  0x10   : > { %p783_p9 = por %p107_p6, %p49_p1  ;;  %p449_p12 = scmp.ge.s32.totalorder %s707_s14, 2 }
  0x11   : > { %s788_s23 = scalar_select %p40_p7, %s695_s11, %s42_s18  }
  0x12   : > { %p790_p11 = por %p113_p10, %p55_p3  ;;  %p500_p13 = scmp.lt.s32.totalorder %s707_s14, 2 }
  0x13   : > { %s797_s25 = sand.u32 1, %s695_s11   ;;  %s480_s27 = sshll.u32 %s703_s13, 9 }
  0x14   : > { %s450_s26 = sshll.u32 %s797_s25, 5  ;;  %s144_s30 = scalar_lea.hbm %s909_s0, %s480_s27 }
  0x15   : > { %s137_s3 = scalar_lea.vmem [#allocation2], %s450_s26  ;;  %p806_p0 = pnand %p500_p13, %p773_p4 }
  0x16   : > { %s145_s4 = sshll.u32 %s137_s3, 4  ;;  %p455_p1 = scmp.ge.s32.totalorder %s707_s14, 1  ;;  %s146_s4 = int_to_ptr.vmem [resolvable:$true] %s145_s4 }
  0x17   : > { %s134_s6 = scalar_lea.sflag [#allocation3], %s797_s25  ;;  %p569_p2 = pneg %p806_p0 }
  0x18   : > { %s580_s7 = scalar_lea.vmem %s146_s4, 512  ;;  %s709_s8 = smov [#allocation2]  }
  0x19   : > { %p581_p3 = scmp.ne.s32.totalorder %s146_s4, %s580_s7  ;;  %s585_s15 = sshll.u32 %s709_s8, 4  ;;  %s586_s15 = int_to_ptr.vmem [resolvable:$false] %s585_s15 }
  0x1a   : > { %s587_s16 = scalar_lea.vmem %s586_s15, 1024  ;;  %p588_p4 = scmp.lt.s32.totalorder %s146_s4, %s586_s15 }
  0x1b   : > { %p583_p5 = pnand %p581_p3, %p569_p2  ;;  %p589_p7 = scmp.lt.s32.totalorder %s587_s16, %s580_s7 }
  0x1d   : > { %p584_p6 = pneg %p583_p5  ;;  %p590_p10 = por %p589_p7, %p588_p4 }
  0x1f   : > { %p591_p13 = pnand %p590_p10, %p584_p6 }
  0x21   : > { %594 = shalt.err (!%p591_p13)
}
  0x22   : > { %s710_s18 = smov 128   ;;  %s711_s19 = smov 8  }
  0x23   : > { %492 = dma.hbm_to_vmem [thread:$0]  (!%p806_p0), %s144_s30, 512, %s146_s4, %s134_s6, %s710_s18, %s710_s18, %s711_s19  }
  0x24   : > { %p172_p3 = scmp.lt.s32.totalorder %s707_s14, 3  ;;  %s453_s20 = sshll.u32 %s797_s25, 1 }
  0x25   : > { %s454_s26 = sshll.u32 %s703_s13, 5  ;;  %s159_s7 = scalar_lea.vmem [#allocation5], %s453_s20 }
  0x26   : > { %p824_p5 = pnand %p455_p1, %p172_p3  ;;  %s165_s3 = scalar_lea.hbm %s910_s1, %s454_s26 }
  0x27   : > { %s167_s8 = sshll.u32 %s159_s7, 4  ;;  %s156_s15 = scalar_lea.sflag [#allocation6], %s797_s25  ;;  %s168_s8 = int_to_ptr.vmem [resolvable:$true] %s167_s8 }
  0x28   : > { %s608_s16 = scalar_lea.vmem %s168_s8, 32  ;;  %s712_s30 = smov [#allocation5]  }
  0x29   : > { %p609_p6 = scmp.ne.s32.totalorder %s168_s8, %s608_s16  ;;  %s613_s4 = sshll.u32 %s712_s30, 4  ;;  %s614_s4 = int_to_ptr.vmem [resolvable:$false] %s613_s4 }
  0x2a   : > { %s615_s6 = scalar_lea.vmem %s614_s4, 64  ;;  %p616_p1 = scmp.lt.s32.totalorder %s168_s8, %s614_s4 }
  0x2b   : > { %p611_p4 = pnand %p609_p6, %p569_p2  ;;  %p617_p10 = scmp.lt.s32.totalorder %s615_s6, %s608_s16 }
  0x2d   : > { %p612_p7 = pneg %p611_p4  ;;  %p618_p13 = por %p617_p10, %p616_p1 }
  0x2f   : > { %p619_p3 = pnand %p618_p13, %p612_p7 }
  0x31   : > { %622 = shalt.err (!%p619_p3)
}
  0x32   : > { %495 = dma.hbm_to_vmem [thread:$0]  (!%p806_p0), %s165_s3, 32, %s168_s8, %s156_s15  }
  0x33   : > { %176 = sbr.rel (%p824_p5) target bundleno = 129 (0x81), region = 28  ;;  %s840_s25 = sand.u32 (!%p824_p5), 1, %s691_s10  }
  0x34   : > { %s456_s18 = sshll.u32 (!%p824_p5), %s840_s25, 5  ;;  %s179_s19 = scalar_lea.sflag (!%p824_p5), [#allocation3], %s840_s25 }
  0x35   : > { %s182_s20 = scalar_lea.vmem (!%p824_p5), [#allocation2], %s456_s18 }
  0x38   : > { %674 = dma.done.wait (%p779_p8), %s179_s19, 512  }
  0x39   : > { %676 = vsyncadd (%p779_p8), %s179_s19, 4294966784  ;;  %s457_s5 = sshll.u32 %s840_s25, 1  ;;  %s188_s26 = scalar_lea.sflag [#allocation6], %s840_s25 }
  0x3a   : > { %s191_s27 = scalar_lea.vmem [#allocation5], %s457_s5 }
  0x3b   : > { %678 = dma.done.wait (%p779_p8), %s188_s26, 32  }
  0x3c   : > { %680 = vsyncadd (%p779_p8), %s188_s26, 4294967264  ;;  %v233_v0 = vld [vmem:[%s182_s20] sm:$0xff]  ;;  %v459_v1 = vld [vmem:[%s182_s20 + $0x8] sm:$0xff]  ;;  %s481_s21 = smul.u32 56, %s840_s25  ;;  %v713_v31 = vmov 0.0   ;;  %s714_s30 = smov [#allocation7]  }
  0x3d   : > { %v238_v2 = vmax.f32 %v233_v0, %v459_v1  ;;  %v460_v3 = vld [vmem:[%s182_s20 + $0x10] sm:$0xff]  ;;  %v461_v4 = vld [vmem:[%s182_s20 + $0x18] sm:$0xff]  ;;  %v228_v18 = vld [vmem:[%s191_s27] sm:$0x3]  ;;  %s482_s28 = smul.u32 896, %s699_s12  ;;  %s326_s12 = scalar_lea.sflag [#allocation4], %s840_s25 }
  0x3e   : > { %v229_v22 = vunpack.c.0.s8 %v228_v18  ;;  %s216_s29 = scalar_lea.vmem [#allocation7], %s481_s21  ;;  %s627_s4 = sshll.u32 %s714_s30, 4  ;;  %s628_s4 = int_to_ptr.vmem [resolvable:$false] %s627_s4 }
  0x3f   : > { %v244_v5 = vmax.f32 %v238_v2, %v460_v3  ;;  %s339_s3 = sshll.u32 %s216_s29, 4  ;;  %s859_s15 = scalar_lea.hbm %s911_s2, %s482_s28  ;;  %s861_s3 = int_to_ptr.vmem [resolvable:$true] %s339_s3 }
  0x40   : > { %vm234_vm0 = vcmp.eq.s32.totalorder %v229_v22, 0  ;;  %vm239_vm1 = vcmp.eq.s32.totalorder %v229_v22, 1  ;;  %vm245_vm2 = vcmp.eq.s32.totalorder %v229_v22, 2  ;;  %vm251_vm3 = vcmp.eq.s32.totalorder %v229_v22, 3  ;;  %s623_s16 = scalar_lea.vmem %s861_s3, 896  ;;  %s629_s6 = scalar_lea.vmem %s628_s4, 1792 }
  0x41   : > { %v250_v6 = vmax.f32 %v244_v5, %v461_v4  ;;  %v235_v24 = vsel %vm234_vm0, %v233_v0, 0.0  ;;  %v240_v25 = vsel %vm239_vm1, %v459_v1, 0.0  ;;  %v246_v27 = vsel %vm245_vm2, %v460_v3, 0.0  ;;  %p624_p8 = scmp.ne.s32.totalorder %s861_s3, %s623_s16  ;;  %p630_p5 = scmp.lt.s32.totalorder %s861_s3, %s628_s4 }
  0x42   : > { %v241_v26 = vadd.f32 %v240_v25, %v235_v24  ;;  %vm230_vm4 = vcmp.ge.s32.totalorder %v229_v22, 0  ;;  %v252_v29 = vsel %vm251_vm3, %v461_v4, 0.0  ;;  %v462_v32 = vsel %vm239_vm1, 1.0, %v713_v31  ;;  %p631_p6 = scmp.lt.s32.totalorder %s629_s6, %s623_s16 }
  0x43   : > { %v254_v7 = vsub.f32 %v233_v0, %v250_v6  ;;  %v257_v8 = vsub.f32 %v459_v1, %v250_v6  ;;  %v260_v9 = vsub.f32 %v460_v3, %v250_v6  ;;  %v263_v10 = vsub.f32 %v461_v4, %v250_v6  ;;  %p625_p0 = pnand %p624_p8, %p783_p9 }
  0x44   : > { %v247_v28 = vadd.f32 %v246_v27, %v241_v26  ;;  %v458_v33 = vsel %vm230_vm4, 1.0, %v713_v31  ;;  %v465_v34 = vsel %vm245_vm2, 1.0, %v713_v31  ;;  %v470_v38 = vsel %vm251_vm3, 1.0, %v713_v31  ;;  %p632_p4 = por %p631_p6, %p630_p5 }
  0x45   : > { %v255_v11 = vmul.f32 1.442695, %v254_v7  ;;  %v258_v12 = vmul.f32 1.442695, %v257_v8  ;;  %v261_v13 = vmul.f32 1.442695, %v260_v9  ;;  %p626_p2 = pneg %p625_p0 }
  0x46   : > { %v264_v14 = vmul.f32 1.442695, %v263_v10  ;;  %v253_v40 = vadd.f32 %v252_v29, %v247_v28 }
  0x47   : > { %555 = vpow2.f32 %v255_v11  ;;  %p633_p7 = pnand %p632_p4, %p626_p2 }
  0x48   : > { %557 = vpow2.f32 %v258_v12 }
  0x49   : > { %559 = vpow2.f32 %v261_v13 }
  0x4a   : > { %561 = vpow2.f32 %v264_v14 }
  0x54   : > { %v556_v15 = vpop.eup %555 }
  0x55   : > { %v558_v16 = vpop.eup %557 }
  0x56   : > { %v560_v17 = vpop.eup %559  ;;  %v266_v19 = vadd.f32 %v558_v16, %v556_v15 }
  0x57   : > { %v562_v20 = vpop.eup %561 }
  0x58   : > { %v267_v21 = vadd.f32 %v560_v17, %v266_v19 }
  0x5a   : > { %v268_v23 = vadd.f32 %v562_v20, %v267_v21 }
  0x5c   : > { %563 = vrcp.f32 %v268_v23 }
  0x5d   : > { %565 = vlog2.f32 %v268_v23 }
  0x69   : > { %v564_v30 = vpop.eup %563 }
  0x6a   : > { %v566_v35 = vpop.eup %565  ;;  %v273_v36 = vmul.f32 %v564_v30, %v558_v16  ;;  %v287_v37 = vmul.f32 %v564_v30, %v560_v17  ;;  %v302_v39 = vmul.f32 %v564_v30, %v562_v20 }
  0x6b   : > { %v316_v41 = vmul.f32 0.6931472, %v566_v35 }
  0x6c   : > { %v275_v42 = vmul.f32 %v462_v32, %v273_v36  ;;  %v281_v43 = vmul.f32 %v458_v33, %v273_v36  ;;  %v290_v44 = vmul.f32 %v465_v34, %v287_v37  ;;  %v296_v45 = vmul.f32 %v458_v33, %v287_v37 }
  0x6d   : > { %v305_v46 = vmul.f32 %v470_v38, %v302_v39  ;;  %v311_v47 = vmul.f32 %v458_v33, %v302_v39  ;;  %v317_v48 = vadd.f32 %v316_v41, %v250_v6 }
  0x6e   : > { %278 = vst [vmem:[%s216_s29] sm:$0xff] %v275_v42  ;;  %464 = vst [vmem:[%s216_s29 + $0x18] sm:$0xff] %v281_v43 }
  0x6f   : > { %v320_v49 = vsub.f32 %v317_v48, %v253_v40  ;;  %467 = vst [vmem:[%s216_s29 + $0x8] sm:$0xff] %v290_v44  ;;  %469 = vst [vmem:[%s216_s29 + $0x20] sm:$0xff] %v296_v45 }
  0x70   : > { %472 = vst [vmem:[%s216_s29 + $0x10] sm:$0xff] %v305_v46  ;;  %474 = vst [vmem:[%s216_s29 + $0x28] sm:$0xff] %v311_v47 }
  0x71   : > { %v321_v50 = vmul.f32 %v458_v33, %v320_v49 }
  0x73   : > { %476 = vst [vmem:[%s216_s29 + $0x30] sm:$0xff] %v321_v50 }
  0x74   : > { %636 = shalt.err (!%p633_p7)
}
  0x75   : > { %s637_s18 = scalar_lea.hbm %s859_s15, 896  ;;  %s641_s5 = scalar_lea.hbm %s911_s2, 1792 }
  0x76   : > { %p638_p1 = scmp.ne.s32.totalorder %s859_s15, %s637_s18  ;;  %p642_p3 = scmp.lt.s32.totalorder %s859_s15, %s911_s2 }
  0x77   : > { %p643_p8 = scmp.lt.s32.totalorder %s641_s5, %s637_s18 }
  0x78   : > { %p639_p10 = pnand %p638_p1, %p783_p9 }
  0x79   : > { %p644_p0 = por %p643_p8, %p642_p3 }
  0x7a   : > { %p640_p13 = pneg %p639_p10 }
  0x7c   : > { %p645_p2 = pnand %p644_p0, %p640_p13 }
  0x7e   : > { %648 = shalt.err (!%p645_p2)
}
  0x7f   : > { %s715_s21 = smov 128   ;;  %s716_s28 = smov 8  }
  0x80   : > { %487 = dma.vmem_to_hbm [thread:$0]  (%p783_p9), %s861_s3, 896, %s859_s15, %s326_s12, %s715_s21, %s715_s21, %s716_s28  }
  0x81 PF: > { %s354_s29 = sand.u32 1, %s687_s9   ;;  %p497_p5 = pnand %p449_p12, %p790_p11 }
  0x82   : > { %s355_s7 = scalar_lea.sflag [#allocation4], %s354_s29 }
  0x83   : > { %p498_p6 = pneg %p497_p5 }
  0x85   : > { %682 = dma.done.wait (%p498_p6), %s355_s7, 896  }
  0x86   : > { %684 = vsyncadd (%p498_p6), %s355_s7, 4294966400  ;;  %s21_s14 = sadd.s32 1, %s707_s14   ;;  %s918_s9 = smov %s691_s10 }
  0x87   : > { %p18_p4 = scmp.ge.s32.totalorder %s21_s14, 4   ;;  %s919_s10 = smov %s695_s11 }
  0x88   : > { %s920_s11 = smov %s788_s23  ;;  %s921_s12 = smov %s703_s13 }
  0x89   : > { %s922_s13 = smov %s924_s17  ;;  %20 = sbr.rel (!%p18_p4) target bundleno = 8 (0x8), region = 99 }
  0x8e   :  { %360 = vsyncpa [#allocation3], 1 }
  0x8f   :  { %362 = vsyncpa [#allocation3 + $0x1], 1 }
  0x90   :  { %363 = vsyncpa [#allocation6], 1 }
  0x91   :  { %365 = vsyncpa [#allocation6 + $0x1], 1 }
  0x92   :  { %366 = vsyncpa [#allocation4], 1 }
  0x93   :  { %368 = vsyncpa [#allocation4 + $0x1], 1 }

</bundles_post_ra>
